<compile_context>
chip_gen: v7x
topology: tpu7x:2x2x1
jax: 0.10.0
libtpu: 0.0.40
codegen_flags: <defaults>
</compile_context>

<pallas_src>
import functools
import math

import jax
import jax.numpy as jnp
from jax.experimental import pallas as pl
from jax.experimental.pallas import tpu as pltpu

ATOMS_PAD = 128        # each action's atom block padded to one full lane tile
PAD_NEG = -1e30        # baked "-inf" for padded atom lanes of the value block


def rainbow_dqn_kernel(x_ref,
                       w1_ref, b1_ref,
                       w2_ref, b2_ref,
                       wva_ref, bva_ref,
                       wout_ref, bout_ref,
                       out_ref, *, num_actions):
    f32 = jnp.float32
    bf16 = jnp.bfloat16

    x = x_ref[...]                                                    # (TB, S) f32

    # feature layer: Linear -> ReLU -> NoisyLinear -> ReLU (bf16 matmul, f32 math)
    h1 = jnp.maximum(
        jnp.dot(x.astype(bf16), w1_ref[...], preferred_element_type=f32)
        + b1_ref[...], 0.0)                                           # (TB, H)
    feat = jnp.maximum(
        jnp.dot(h1.astype(bf16), w2_ref[...], preferred_element_type=f32)
        + b2_ref[...], 0.0)                                           # (TB, H)

    # fused value|advantage hidden layer: single full-width (H, 128) matmul.
    va = jnp.maximum(
        jnp.dot(feat.astype(bf16), wva_ref[...], preferred_element_type=f32)
        + bva_ref[...], 0.0)                                          # (TB, 128) = [v1 | a1]

    # fused output layer: block-diagonal packed weight -> (TB, (A+1)*128) logits.
    # Padded lanes of the VALUE block are already -1e30 via the baked bias;
    # padded lanes of each advantage block are exactly 0.
    logits = (jnp.dot(va.astype(bf16), wout_ref[...], preferred_element_type=f32)
              + bout_ref[...])

    value = logits[:, :ATOMS_PAD]                                     # (TB, 128)
    adv = [logits[:, (j + 1) * ATOMS_PAD:(j + 2) * ATOMS_PAD]         # static, vreg-aligned
           for j in range(num_actions)]
    mean_adv = sum(adv) * (1.0 / num_actions)                         # (TB, 128), finite

    for j in range(num_actions):
        q = value + (adv[j] - mean_adv)                               # padded lanes ~ -1e30
        q = q - jnp.max(q, axis=-1, keepdims=True)                    # stable softmax
        e = jnp.exp(q)                                                # padded lanes -> 0
        inv = pl.reciprocal(jnp.sum(e, axis=-1, keepdims=True), approx=True)  # EUP vrcp
        out_ref[:, j * ATOMS_PAD:(j + 1) * ATOMS_PAD] = (e * inv).astype(out_ref.dtype)


def rainbow_forward_padded(x, packed, *, tile_b=512):
    """Hot path.  x: (B, state_size) f32.

    Returns the padded, lane-dense bf16 slab of shape (Bp, A*128): rows 0..B-1
    are valid, each action's atoms occupy lanes [j*128, j*128+51) and padded
    lanes are exactly 0.  Consumers should index/crop downstream (or fuse the
    crop) rather than materializing a (B, A, 51) copy.
    """
    B, S = x.shape
    A = packed["num_actions"]

    # pad batch to a multiple of 8 (sublane) and of the batch tile
    b8 = ((B + 7) // 8) * 8
    tile_b = max(8, min(tile_b, b8))
    # v7x megacore: prefer >= 2 grid steps so ("parallel",) can use both TCs.
    if b8 // tile_b < 2 and b8 >= 16:
        tile_b = max(8, ((b8 // 2) // 8) * 8)
    Bp = ((b8 + tile_b - 1) // tile_b) * tile_b
    if Bp != B:
        x = jnp.pad(x, ((0, Bp - B), (0, 0)))
    grid = (Bp // tile_b,)

    kernel = functools.partial(rainbow_dqn_kernel, num_actions=A)

    def resident(arr):  # weight/bias stays VMEM-resident across all grid steps
        ndim = arr.ndim
        return pl.BlockSpec(arr.shape, lambda i, _n=ndim: (0,) * _n)

    out = pl.pallas_call(
        kernel,
        out_shape=jax.ShapeDtypeStruct((Bp, A * ATOMS_PAD), jnp.bfloat16),
        grid=grid,
        in_specs=[
            pl.BlockSpec((tile_b, S), lambda i: (i, 0)),
            resident(packed["w1"]), resident(packed["b1"]),
            resident(packed["w2"]), resident(packed["b2"]),
            resident(packed["w_va"]), resident(packed["b_va"]),
            resident(packed["w_out"]), resident(packed["b_out"]),
        ],
        out_specs=pl.BlockSpec((tile_b, A * ATOMS_PAD), lambda i: (i, 0)),
        compiler_params=pltpu.CompilerParams(
            dimension_semantics=("parallel",),
            vmem_limit_bytes=48 * 1024 * 1024),
    )(x, packed["w1"], packed["b1"], packed["w2"], packed["b2"],
      packed["w_va"], packed["b_va"], packed["w_out"], packed["b_out"])

    return out


def crop_dist(padded, batch, num_actions, num_atoms):
    """Consumer-side crop back to the PyTorch (B, A, num_atoms) shape."""
    Bp = padded.shape[0]
    return padded.reshape(Bp, num_actions, ATOMS_PAD)[:batch, :, :num_atoms]


def rainbow_forward(x, packed, *, tile_b=512):
    """API-parity wrapper: (B, action_size, num_atoms) f32 distributions."""
    A, N = packed["num_actions"], packed["num_atoms"]
    out = rainbow_forward_padded(x, packed, tile_b=tile_b)
    return crop_dist(out, x.shape[0], A, N).astype(jnp.float32)


def init_params(key, state_size, action_size, num_atoms, hidden_size):
    """Deterministic PyTorch-Linear-style init (uniform +/- 1/sqrt(fan_in))."""
    h2 = hidden_size // 2

    def linear(k, fan_in, fan_out):
        kw, kb = jax.random.split(k)
        bound = 1.0 / math.sqrt(fan_in)
        w = jax.random.uniform(kw, (fan_in, fan_out), jnp.float32, -bound, bound)
        b = jax.random.uniform(kb, (1, fan_out), jnp.float32, -bound, bound)
        return w, b

    keys = jax.random.split(key, 6)
    w1, b1 = linear(keys[0], state_size, hidden_size)
    w2, b2 = linear(keys[1], hidden_size, hidden_size)
    wv1, bv1 = linear(keys[2], hidden_size, h2)
    wv2, bv2 = linear(keys[3], h2, num_atoms)
    wa1, ba1 = linear(keys[4], hidden_size, h2)
    wa2, ba2 = linear(keys[5], h2, action_size * num_atoms)
    return dict(w1=w1, b1=b1, w2=w2, b2=b2,
                wv1=wv1, bv1=bv1, wv2=wv2, bv2=bv2,
                wa1=wa1, ba1=ba1, wa2=wa2, ba2=ba2)


def pack_params(p, action_size, num_atoms):
    """Kernel-friendly packing: bf16 matmul weights, f32 biases, fused V/A
    hidden layer, block-diagonal output layer with 128-lane padded atom blocks.
    The -inf atom mask is baked into the padded lanes of the VALUE bias block
    only (advantage blocks stay 0 so mean_adv remains finite)."""
    bf16, f32 = jnp.bfloat16, jnp.float32
    h2 = p["wv1"].shape[1]
    A, N = action_size, num_atoms

    # fused hidden layer: [wv1 | wa1] -> (H, 2*h2)
    w_va = jnp.concatenate([p["wv1"], p["wa1"]], axis=1).astype(bf16)
    b_va = jnp.concatenate([p["bv1"], p["ba1"]], axis=1).astype(f32)

    # per-action advantage weights padded 51 -> 128 lanes each (zero padding)
    wa2_pad = (jnp.zeros((h2, A, ATOMS_PAD), f32)
               .at[:, :, :N].set(p["wa2"].reshape(h2, A, N))
               .reshape(h2, A * ATOMS_PAD))
    wv2_pad = jnp.zeros((h2, ATOMS_PAD), f32).at[:, :N].set(p["wv2"])

    # block-diagonal output weight: rows 0..h2-1 -> value block, rows h2.. -> actions
    w_out = jnp.zeros((2 * h2, (A + 1) * ATOMS_PAD), f32)
    w_out = w_out.at[:h2, :ATOMS_PAD].set(wv2_pad)
    w_out = w_out.at[h2:, ATOMS_PAD:].set(wa2_pad)
    w_out = w_out.astype(bf16)

    # output bias: value block gets the baked -inf mask in padded lanes,
    # advantage blocks get zero padding.
    bv2_pad = jnp.full((1, ATOMS_PAD), PAD_NEG, f32).at[:, :N].set(p["bv2"])
    ba2_pad = (jnp.zeros((1, A, ATOMS_PAD), f32)
               .at[:, :, :N].set(p["ba2"].reshape(1, A, N))
               .reshape(1, A * ATOMS_PAD))
    b_out = jnp.concatenate([bv2_pad, ba2_pad], axis=1)               # (1, (A+1)*128)

    return dict(w1=p["w1"].astype(bf16), b1=p["b1"].astype(f32),
                w2=p["w2"].astype(bf16), b2=p["b2"].astype(f32),
                w_va=w_va, b_va=b_va, w_out=w_out, b_out=b_out,
                num_actions=A, num_atoms=N)


def reference_forward(x, p, action_size, num_atoms):
    """Pure-JAX reference matching the PyTorch forward (same bf16 matmul inputs)."""
    bf16 = jnp.bfloat16

    def mm(a, w):
        return jnp.dot(a.astype(bf16), w.astype(bf16),
                       preferred_element_type=jnp.float32)

    h1 = jax.nn.relu(mm(x, p["w1"]) + p["b1"])
    feat = jax.nn.relu(mm(h1, p["w2"]) + p["b2"])
    v1 = jax.nn.relu(mm(feat, p["wv1"]) + p["bv1"])
    value = (mm(v1, p["wv2"]) + p["bv2"])[:, None, :]                 # (B, 1, N)
    a1 = jax.nn.relu(mm(feat, p["wa1"]) + p["ba1"])
    adv = (mm(a1, p["wa2"]) + p["ba2"]).reshape(x.shape[0], action_size, num_atoms)
    q = value + (adv - adv.mean(axis=1, keepdims=True))
    return jax.nn.softmax(q, axis=2)


if __name__ == "__main__":
    batch = 8
    state_size = 32
    action_size = 4
    num_atoms = 51
    hidden_size = 128

    key = jax.random.PRNGKey(0)
    kx, kp = jax.random.split(key)
    x = jax.random.normal(kx, (batch, state_size), dtype=jnp.float32)
    params = init_params(kp, state_size, action_size, num_atoms, hidden_size)
    packed = pack_params(params, action_size, num_atoms)

    # Hot path: padded bf16 slab straight from the kernel (no crop op).
    padded = jax.block_until_ready(rainbow_forward_padded(x, packed))
    assert padded.shape == (8, action_size * ATOMS_PAD)

    # Consumer-side crop (done here only for verification against the reference).
    dist = crop_dist(padded, batch, action_size, num_atoms).astype(jnp.float32)
    dist = jax.block_until_ready(dist)

    ref = reference_forward(x, params, action_size, num_atoms)
    assert dist.shape == (batch, action_size, num_atoms)

    # Padded atom lanes must be exactly zero (baked -1e30 bias -> exp underflow).
    pad_lanes = padded.reshape(-1, action_size, ATOMS_PAD)[:batch, :, num_atoms:]
    assert float(jnp.max(jnp.abs(pad_lanes.astype(jnp.float32)))) == 0.0

    # bf16 output + approx reciprocal -> relaxed tolerances.
    assert jnp.allclose(dist.sum(axis=2), 1.0, atol=1e-2), "rows must be distributions"
    assert jnp.allclose(dist, ref, atol=1e-2, rtol=2e-2), "mismatch vs reference"

    print("KERNEL_OK")
</pallas_src>

<mosaic_0001>
module attributes {stable_mosaic.version = 11 : i64} {
  func.func @rainbow_dqn_kernel(%arg0: i32, %arg1: memref<8x32xf32, #tpu.memory_space<vmem>>, %arg2: memref<32x128xbf16, #tpu.memory_space<vmem>>, %arg3: memref<1x128xf32, #tpu.memory_space<vmem>>, %arg4: memref<128x128xbf16, #tpu.memory_space<vmem>>, %arg5: memref<1x128xf32, #tpu.memory_space<vmem>>, %arg6: memref<128x128xbf16, #tpu.memory_space<vmem>>, %arg7: memref<1x128xf32, #tpu.memory_space<vmem>>, %arg8: memref<128x640xbf16, #tpu.memory_space<vmem>>, %arg9: memref<1x640xf32, #tpu.memory_space<vmem>>, %arg10: memref<8x512xbf16, #tpu.memory_space<vmem>>) attributes {dimension_semantics = [#tpu.dimension_semantics<parallel>], iteration_bounds = array<i64: 1>, scalar_prefetch = 0 : i64, scratch_operands = 0 : i64, tpu.core_type = #tpu.core_type<tc>, window_params = [{transform_indices = @transform_0, window_bounds = array<i64: 8, 32>}, {pipeline_mode = #tpu.pipeline_mode<synchronous>, transform_indices = @transform_1, window_bounds = array<i64: 32, 128>}, {pipeline_mode = #tpu.pipeline_mode<synchronous>, transform_indices = @transform_2, window_bounds = array<i64: 1, 128>}, {pipeline_mode = #tpu.pipeline_mode<synchronous>, transform_indices = @transform_3, window_bounds = array<i64: 128, 128>}, {pipeline_mode = #tpu.pipeline_mode<synchronous>, transform_indices = @transform_4, window_bounds = array<i64: 1, 128>}, {pipeline_mode = #tpu.pipeline_mode<synchronous>, transform_indices = @transform_5, window_bounds = array<i64: 128, 128>}, {pipeline_mode = #tpu.pipeline_mode<synchronous>, transform_indices = @transform_6, window_bounds = array<i64: 1, 128>}, {pipeline_mode = #tpu.pipeline_mode<synchronous>, transform_indices = @transform_7, window_bounds = array<i64: 128, 640>}, {pipeline_mode = #tpu.pipeline_mode<synchronous>, transform_indices = @transform_8, window_bounds = array<i64: 1, 640>}, {transform_indices = @transform_9, window_bounds = array<i64: 8, 512>}]} {
    %c0 = arith.constant 0 : index
    %c0_0 = arith.constant 0 : index
    %0 = vector.load %arg1[%c0, %c0_0] : memref<8x32xf32, #tpu.memory_space<vmem>>, vector<8x32xf32>
    %1 = arith.truncf %0 : vector<8x32xf32> to vector<8x32xbf16>
    %c0_1 = arith.constant 0 : index
    %c0_2 = arith.constant 0 : index
    %2 = vector.load %arg2[%c0_1, %c0_2] : memref<32x128xbf16, #tpu.memory_space<vmem>>, vector<32x128xbf16>
    %cst = arith.constant dense<0.000000e+00> : vector<8x128xf32>
    %3 = tpu.matmul %1, %2, %cst {dimension_numbers = #tpu.dot_dimension_numbers<[1], [0], [0], [1], [0, 0, 1, 1], [], []>} : vector<8x32xbf16>, vector<32x128xbf16>, vector<8x128xf32> -> vector<8x128xf32>
    %c0_3 = arith.constant 0 : index
    %c0_4 = arith.constant 0 : index
    %4 = vector.load %arg3[%c0_3, %c0_4] : memref<1x128xf32, #tpu.memory_space<vmem>>, vector<1x128xf32>
    %5 = vector.broadcast %4 : vector<1x128xf32> to vector<8x128xf32>
    %6 = arith.addf %3, %5 : vector<8x128xf32>
    %cst_5 = arith.constant 0.000000e+00 : f32
    %7 = vector.broadcast %cst_5 : f32 to vector<8x128xf32>
    %8 = arith.maximumf %6, %7 : vector<8x128xf32>
    %9 = arith.truncf %8 : vector<8x128xf32> to vector<8x128xbf16>
    %c0_6 = arith.constant 0 : index
    %c0_7 = arith.constant 0 : index
    %10 = vector.load %arg4[%c0_6, %c0_7] : memref<128x128xbf16, #tpu.memory_space<vmem>>, vector<128x128xbf16>
    %cst_8 = arith.constant dense<0.000000e+00> : vector<8x128xf32>
    %11 = tpu.matmul %9, %10, %cst_8 {dimension_numbers = #tpu.dot_dimension_numbers<[1], [0], [0], [1], [0, 0, 1, 1], [], []>} : vector<8x128xbf16>, vector<128x128xbf16>, vector<8x128xf32> -> vector<8x128xf32>
    %c0_9 = arith.constant 0 : index
    %c0_10 = arith.constant 0 : index
    %12 = vector.load %arg5[%c0_9, %c0_10] : memref<1x128xf32, #tpu.memory_space<vmem>>, vector<1x128xf32>
    %13 = vector.broadcast %12 : vector<1x128xf32> to vector<8x128xf32>
    %14 = arith.addf %11, %13 : vector<8x128xf32>
    %cst_11 = arith.constant 0.000000e+00 : f32
    %15 = vector.broadcast %cst_11 : f32 to vector<8x128xf32>
    %16 = arith.maximumf %14, %15 : vector<8x128xf32>
    %17 = arith.truncf %16 : vector<8x128xf32> to vector<8x128xbf16>
    %c0_12 = arith.constant 0 : index
    %c0_13 = arith.constant 0 : index
    %18 = vector.load %arg6[%c0_12, %c0_13] : memref<128x128xbf16, #tpu.memory_space<vmem>>, vector<128x128xbf16>
    %cst_14 = arith.constant dense<0.000000e+00> : vector<8x128xf32>
    %19 = tpu.matmul %17, %18, %cst_14 {dimension_numbers = #tpu.dot_dimension_numbers<[1], [0], [0], [1], [0, 0, 1, 1], [], []>} : vector<8x128xbf16>, vector<128x128xbf16>, vector<8x128xf32> -> vector<8x128xf32>
    %c0_15 = arith.constant 0 : index
    %c0_16 = arith.constant 0 : index
    %20 = vector.load %arg7[%c0_15, %c0_16] : memref<1x128xf32, #tpu.memory_space<vmem>>, vector<1x128xf32>
    %21 = vector.broadcast %20 : vector<1x128xf32> to vector<8x128xf32>
    %22 = arith.addf %19, %21 : vector<8x128xf32>
    %cst_17 = arith.constant 0.000000e+00 : f32
    %23 = vector.broadcast %cst_17 : f32 to vector<8x128xf32>
    %24 = arith.maximumf %22, %23 : vector<8x128xf32>
    %25 = arith.truncf %24 : vector<8x128xf32> to vector<8x128xbf16>
    %c0_18 = arith.constant 0 : index
    %c0_19 = arith.constant 0 : index
    %26 = vector.load %arg8[%c0_18, %c0_19] : memref<128x640xbf16, #tpu.memory_space<vmem>>, vector<128x640xbf16>
    %cst_20 = arith.constant dense<0.000000e+00> : vector<8x640xf32>
    %27 = tpu.matmul %25, %26, %cst_20 {dimension_numbers = #tpu.dot_dimension_numbers<[1], [0], [0], [1], [0, 0, 1, 1], [], []>} : vector<8x128xbf16>, vector<128x640xbf16>, vector<8x640xf32> -> vector<8x640xf32>
    %c0_21 = arith.constant 0 : index
    %c0_22 = arith.constant 0 : index
    %28 = vector.load %arg9[%c0_21, %c0_22] : memref<1x640xf32, #tpu.memory_space<vmem>>, vector<1x640xf32>
    %29 = vector.broadcast %28 : vector<1x640xf32> to vector<8x640xf32>
    %30 = arith.addf %27, %29 : vector<8x640xf32>
    %31 = vector.extract_strided_slice %30 {offsets = [0, 0], sizes = [8, 128], strides = [1, 1]} : vector<8x640xf32> to vector<8x128xf32>
    %32 = vector.extract_strided_slice %30 {offsets = [0, 128], sizes = [8, 128], strides = [1, 1]} : vector<8x640xf32> to vector<8x128xf32>
    %33 = vector.extract_strided_slice %30 {offsets = [0, 256], sizes = [8, 128], strides = [1, 1]} : vector<8x640xf32> to vector<8x128xf32>
    %34 = vector.extract_strided_slice %30 {offsets = [0, 384], sizes = [8, 128], strides = [1, 1]} : vector<8x640xf32> to vector<8x128xf32>
    %35 = vector.extract_strided_slice %30 {offsets = [0, 512], sizes = [8, 128], strides = [1, 1]} : vector<8x640xf32> to vector<8x128xf32>
    %cst_23 = arith.constant 0.000000e+00 : f32
    %36 = vector.broadcast %cst_23 : f32 to vector<8x128xf32>
    %37 = arith.addf %36, %32 : vector<8x128xf32>
    %38 = arith.addf %37, %33 : vector<8x128xf32>
    %39 = arith.addf %38, %34 : vector<8x128xf32>
    %40 = arith.addf %39, %35 : vector<8x128xf32>
    %cst_24 = arith.constant 2.500000e-01 : f32
    %41 = vector.broadcast %cst_24 : f32 to vector<8x128xf32>
    %42 = arith.mulf %40, %41 : vector<8x128xf32>
    %43 = arith.subf %32, %42 : vector<8x128xf32>
    %44 = arith.addf %31, %43 : vector<8x128xf32>
    %cst_25 = arith.constant dense<0xFF800000> : vector<8xf32>
    %45 = vector.multi_reduction <maximumf>, %44, %cst_25 [1] : vector<8x128xf32> to vector<8xf32>
    %46 = vector.shape_cast %45 : vector<8xf32> to vector<8x1xf32>
    %47 = vector.broadcast %46 : vector<8x1xf32> to vector<8x128xf32>
    %48 = arith.subf %44, %47 : vector<8x128xf32>
    %49 = math.exp %48 : vector<8x128xf32>
    %cst_26 = arith.constant dense<0.000000e+00> : vector<8xf32>
    %50 = vector.multi_reduction <add>, %49, %cst_26 [1] : vector<8x128xf32> to vector<8xf32>
    %51 = vector.shape_cast %50 : vector<8xf32> to vector<8x1xf32>
    %52 = tpu.reciprocal %51 {approx = true} : vector<8x1xf32> -> vector<8x1xf32>
    %53 = vector.broadcast %52 : vector<8x1xf32> to vector<8x128xf32>
    %54 = arith.mulf %49, %53 : vector<8x128xf32>
    %55 = arith.truncf %54 : vector<8x128xf32> to vector<8x128xbf16>
    %c0_27 = arith.constant 0 : index
    %c0_28 = arith.constant 0 : index
    %56 = vector.load %arg10[%c0_27, %c0_28] : memref<8x512xbf16, #tpu.memory_space<vmem>>, vector<8x128xbf16>
    tpu.vector_store %arg10[%c0_27, %c0_28], %55 {strides = array<i32>} : memref<8x512xbf16, #tpu.memory_space<vmem>>, vector<8x128xbf16>,
    %57 = arith.subf %33, %42 : vector<8x128xf32>
    %58 = arith.addf %31, %57 : vector<8x128xf32>
    %cst_29 = arith.constant dense<0xFF800000> : vector<8xf32>
    %59 = vector.multi_reduction <maximumf>, %58, %cst_29 [1] : vector<8x128xf32> to vector<8xf32>
    %60 = vector.shape_cast %59 : vector<8xf32> to vector<8x1xf32>
    %61 = vector.broadcast %60 : vector<8x1xf32> to vector<8x128xf32>
    %62 = arith.subf %58, %61 : vector<8x128xf32>
    %63 = math.exp %62 : vector<8x128xf32>
    %cst_30 = arith.constant dense<0.000000e+00> : vector<8xf32>
    %64 = vector.multi_reduction <add>, %63, %cst_30 [1] : vector<8x128xf32> to vector<8xf32>
    %65 = vector.shape_cast %64 : vector<8xf32> to vector<8x1xf32>
    %66 = tpu.reciprocal %65 {approx = true} : vector<8x1xf32> -> vector<8x1xf32>
    %67 = vector.broadcast %66 : vector<8x1xf32> to vector<8x128xf32>
    %68 = arith.mulf %63, %67 : vector<8x128xf32>
    %69 = arith.truncf %68 : vector<8x128xf32> to vector<8x128xbf16>
    %c0_31 = arith.constant 0 : index
    %c128 = arith.constant 128 : index
    %70 = vector.load %arg10[%c0_31, %c128] : memref<8x512xbf16, #tpu.memory_space<vmem>>, vector<8x128xbf16>
    tpu.vector_store %arg10[%c0_31, %c128], %69 {strides = array<i32>} : memref<8x512xbf16, #tpu.memory_space<vmem>>, vector<8x128xbf16>,
    %71 = arith.subf %34, %42 : vector<8x128xf32>
    %72 = arith.addf %31, %71 : vector<8x128xf32>
    %cst_32 = arith.constant dense<0xFF800000> : vector<8xf32>
    %73 = vector.multi_reduction <maximumf>, %72, %cst_32 [1] : vector<8x128xf32> to vector<8xf32>
    %74 = vector.shape_cast %73 : vector<8xf32> to vector<8x1xf32>
    %75 = vector.broadcast %74 : vector<8x1xf32> to vector<8x128xf32>
    %76 = arith.subf %72, %75 : vector<8x128xf32>
    %77 = math.exp %76 : vector<8x128xf32>
    %cst_33 = arith.constant dense<0.000000e+00> : vector<8xf32>
    %78 = vector.multi_reduction <add>, %77, %cst_33 [1] : vector<8x128xf32> to vector<8xf32>
    %79 = vector.shape_cast %78 : vector<8xf32> to vector<8x1xf32>
    %80 = tpu.reciprocal %79 {approx = true} : vector<8x1xf32> -> vector<8x1xf32>
    %81 = vector.broadcast %80 : vector<8x1xf32> to vector<8x128xf32>
    %82 = arith.mulf %77, %81 : vector<8x128xf32>
    %83 = arith.truncf %82 : vector<8x128xf32> to vector<8x128xbf16>
    %c0_34 = arith.constant 0 : index
    %c256 = arith.constant 256 : index
    %84 = vector.load %arg10[%c0_34, %c256] : memref<8x512xbf16, #tpu.memory_space<vmem>>, vector<8x128xbf16>
    tpu.vector_store %arg10[%c0_34, %c256], %83 {strides = array<i32>} : memref<8x512xbf16, #tpu.memory_space<vmem>>, vector<8x128xbf16>,
    %85 = arith.subf %35, %42 : vector<8x128xf32>
    %86 = arith.addf %31, %85 : vector<8x128xf32>
    %cst_35 = arith.constant dense<0xFF800000> : vector<8xf32>
    %87 = vector.multi_reduction <maximumf>, %86, %cst_35 [1] : vector<8x128xf32> to vector<8xf32>
    %88 = vector.shape_cast %87 : vector<8xf32> to vector<8x1xf32>
    %89 = vector.broadcast %88 : vector<8x1xf32> to vector<8x128xf32>
    %90 = arith.subf %86, %89 : vector<8x128xf32>
    %91 = math.exp %90 : vector<8x128xf32>
    %cst_36 = arith.constant dense<0.000000e+00> : vector<8xf32>
    %92 = vector.multi_reduction <add>, %91, %cst_36 [1] : vector<8x128xf32> to vector<8xf32>
    %93 = vector.shape_cast %92 : vector<8xf32> to vector<8x1xf32>
    %94 = tpu.reciprocal %93 {approx = true} : vector<8x1xf32> -> vector<8x1xf32>
    %95 = vector.broadcast %94 : vector<8x1xf32> to vector<8x128xf32>
    %96 = arith.mulf %91, %95 : vector<8x128xf32>
    %97 = arith.truncf %96 : vector<8x128xf32> to vector<8x128xbf16>
    %c0_37 = arith.constant 0 : index
    %c384 = arith.constant 384 : index
    %98 = vector.load %arg10[%c0_37, %c384] : memref<8x512xbf16, #tpu.memory_space<vmem>>, vector<8x128xbf16>
    tpu.vector_store %arg10[%c0_37, %c384], %97 {strides = array<i32>} : memref<8x512xbf16, #tpu.memory_space<vmem>>, vector<8x128xbf16>,
    return
  }
  func.func @transform_0(%arg0: i32) -> (i32, i32) {
    %c0_i32 = arith.constant 0 : i32
    %c0_i32_0 = arith.constant 0 : i32
    return %arg0, %c0_i32 : i32, i32
  }
  func.func @transform_1(%arg0: i32) -> (i32, i32) {
    %c0_i32 = arith.constant 0 : i32
    %c0_i32_0 = arith.constant 0 : i32
    %c0_i32_1 = arith.constant 0 : i32
    return %c0_i32, %c0_i32_0 : i32, i32
  }
  func.func @transform_2(%arg0: i32) -> (i32, i32) {
    %c0_i32 = arith.constant 0 : i32
    %c0_i32_0 = arith.constant 0 : i32
    %c0_i32_1 = arith.constant 0 : i32
    return %c0_i32, %c0_i32_0 : i32, i32
  }
  func.func @transform_3(%arg0: i32) -> (i32, i32) {
    %c0_i32 = arith.constant 0 : i32
    %c0_i32_0 = arith.constant 0 : i32
    %c0_i32_1 = arith.constant 0 : i32
    return %c0_i32, %c0_i32_0 : i32, i32
  }
  func.func @transform_4(%arg0: i32) -> (i32, i32) {
    %c0_i32 = arith.constant 0 : i32
    %c0_i32_0 = arith.constant 0 : i32
    %c0_i32_1 = arith.constant 0 : i32
    return %c0_i32, %c0_i32_0 : i32, i32
  }
  func.func @transform_5(%arg0: i32) -> (i32, i32) {
    %c0_i32 = arith.constant 0 : i32
    %c0_i32_0 = arith.constant 0 : i32
    %c0_i32_1 = arith.constant 0 : i32
    return %c0_i32, %c0_i32_0 : i32, i32
  }
  func.func @transform_6(%arg0: i32) -> (i32, i32) {
    %c0_i32 = arith.constant 0 : i32
    %c0_i32_0 = arith.constant 0 : i32
    %c0_i32_1 = arith.constant 0 : i32
    return %c0_i32, %c0_i32_0 : i32, i32
  }
  func.func @transform_7(%arg0: i32) -> (i32, i32) {
    %c0_i32 = arith.constant 0 : i32
    %c0_i32_0 = arith.constant 0 : i32
    %c0_i32_1 = arith.constant 0 : i32
    return %c0_i32, %c0_i32_0 : i32, i32
  }
  func.func @transform_8(%arg0: i32) -> (i32, i32) {
    %c0_i32 = arith.constant 0 : i32
    %c0_i32_0 = arith.constant 0 : i32
    %c0_i32_1 = arith.constant 0 : i32
    return %c0_i32, %c0_i32_0 : i32, i32
  }
  func.func @transform_9(%arg0: i32) -> (i32, i32) {
    %c0_i32 = arith.constant 0 : i32
    %c0_i32_0 = arith.constant 0 : i32
    return %arg0, %c0_i32 : i32, i32
  }
}

</mosaic_0001>

<bundles_post_ra>
// kernel: tpu_custom_call.1
= control target key start
LH: loop header
LB: loop body
LE: loop exit
PB: predicated region body
PF: predicated region fallthrough
CT: control target
= control target key end

     0   :  { %14 = vsyncpa [#allocation3], 0  ;;  %s1469_s0 = inlined_call_operand.hbm [shape: f32[8,32], index: 0, kind: input, shape index: {}]   ;;  %s1470_s1 = inlined_call_operand.hbm [shape: bf16[32,128], index: 1, kind: input, shape index: {}]   ;;  %s1471_s2 = inlined_call_operand.vmem [shape: f32[1,128], index: 2, kind: input, shape index: {}]   ;;  %s1472_s3 = inlined_call_operand.hbm [shape: bf16[128,128], index: 3, kind: input, shape index: {}]   ;;  %s1473_s4 = inlined_call_operand.vmem [shape: f32[1,128], index: 4, kind: input, shape index: {}]   ;;  %s1474_s5 = inlined_call_operand.hbm [shape: bf16[128,128], index: 5, kind: input, shape index: {}]   ;;  %s1475_s6 = inlined_call_operand.vmem [shape: f32[1,128], index: 6, kind: input, shape index: {}]   ;;  %s1476_s7 = inlined_call_operand.hbm [shape: bf16[128,640], index: 7, kind: input, shape index: {}]   ;;  %s1477_s8 = inlined_call_operand.vmem [shape: f32[1,640], index: 8, kind: input, shape index: {}]   ;;  %s1478_s9 = inlined_call_operand.hbm [shape: bf16[8,512], index: 9, kind: output, shape index: {}]  }
   0x1   :  { %15 = vsyncpa [#allocation6], 0 }
   0x2   :  { %16 = vsyncpa [#allocation9], 0 }
   0x3   :  { %17 = vsyncpa [#allocation4], 0  ;;  %s1279_s30 = smov [#allocation5]   ;;  %s1139_s13 = scalar_lea.hbm %s1470_s1, 256 }
   0x4   :  { %s33_s10 = sshll.u32 %s1279_s30, 4  ;;  %p1140_p0 = scmp.ne.s32.totalorder %s1470_s1, %s1139_s13  ;;  %s34_s10 = int_to_ptr.vmem [resolvable:$true] %s33_s10 }
   0x5   :  { %p1143_p1 = scmp.lt.u32.totalorder %s1139_s13, %s1470_s1 }
   0x7   :  { %p1145_p2 = pnand %p1143_p1, %p1140_p0 }
   0x9   :  { %1148 = shalt.err (!%p1145_p2)
}
   0xa   :  { %s1149_s18 = scalar_lea.vmem %s34_s10, 256  ;;  %p1154_p4 = scmp.lt.s32.totalorder %s34_s10, %s34_s10 }
   0xb   :  { %p1150_p3 = scmp.ne.s32.totalorder %s34_s10, %s1149_s18  ;;  %p1155_p5 = scmp.lt.s32.totalorder %s1149_s18, %s1149_s18 }
   0xd   :  { %p1156_p6 = por %p1155_p5, %p1154_p4 }
   0xf   :  { %p1157_p7 = pnand %p1156_p6, %p1150_p3 }
  0x11   :  { %1160 = shalt.err (!%p1157_p7)
}
  0x12   :  { %s1280_s19 = smov 64   ;;  %s1281_s20 = smov 4  }
  0x13   :  { %39 = dma.hbm_to_vmem [thread:$0]  %s1470_s1, 256, %s34_s10, [#allocation6], %s1280_s19, %s1280_s19, %s1281_s20  }
  0x14   :  { %s1282_s23 = smov [#allocation8]   ;;  %s1283_s25 = smov [#allocation2]  }
  0x15   :  { %s61_s24 = sshll.u32 %s1282_s23, 4  ;;  %s24_s26 = sshll.u32 %s1283_s25, 4  ;;  %s62_s24 = int_to_ptr.vmem [resolvable:$true] %s61_s24  ;;  %s25_s26 = int_to_ptr.vmem [resolvable:$true] %s24_s26 }
  0x16   :  { %s1161_s29 = scalar_lea.hbm %s1474_s5, 1024 }
  0x17   :  { %p1162_p8 = scmp.ne.s32.totalorder %s1474_s5, %s1161_s29  ;;  %p1165_p9 = scmp.lt.u32.totalorder %s1161_s29, %s1474_s5 }
  0x19   :  { %p1167_p10 = pnand %p1165_p9, %p1162_p8 }
  0x1b   :  { %1170 = shalt.err (!%p1167_p10)
}
  0x1c   :  { %s1171_s1 = scalar_lea.vmem %s62_s24, 1024  ;;  %p1176_p12 = scmp.lt.s32.totalorder %s62_s24, %s62_s24 }
  0x1d   :  { %p1172_p11 = scmp.ne.s32.totalorder %s62_s24, %s1171_s1  ;;  %p1177_p13 = scmp.lt.s32.totalorder %s1171_s1, %s1171_s1 }
  0x1f   :  { %p1178_p0 = por %p1177_p13, %p1176_p12 }
  0x21   :  { %p1179_p1 = pnand %p1178_p0, %p1172_p11 }
  0x23   :  { %1182 = shalt.err (!%p1179_p1)
}
  0x24   :  { %67 = dma.hbm_to_vmem [thread:$0]  %s1474_s5, 1024, %s62_s24, [#allocation9], %s1280_s19, %s1280_s19, %s1281_s20  }
  0x25   :  { %s1183_s17 = scalar_lea.hbm %s1469_s0, 128 }
  0x26   :  { %p1184_p2 = scmp.ne.s32.totalorder %s1469_s0, %s1183_s17  ;;  %p1187_p3 = scmp.lt.u32.totalorder %s1183_s17, %s1469_s0 }
  0x28   :  { %p1189_p4 = pnand %p1187_p3, %p1184_p2 }
  0x2a   :  { %1192 = shalt.err (!%p1189_p4)
}
  0x2b   :  { %s1193_s25 = scalar_lea.vmem %s25_s26, 128  ;;  %p1198_p6 = scmp.lt.s32.totalorder %s25_s26, %s25_s26 }
  0x2c   :  { %p1194_p5 = scmp.ne.s32.totalorder %s25_s26, %s1193_s25  ;;  %p1199_p7 = scmp.lt.s32.totalorder %s1193_s25, %s1193_s25 }
  0x2e   :  { %p1200_p8 = por %p1199_p7, %p1198_p6 }
  0x30   :  { %p1201_p9 = pnand %p1200_p8, %p1194_p5 }
  0x32   :  { %1204 = shalt.err (!%p1201_p9)
}
  0x33   :  { %27 = dma.hbm_to_vmem [thread:$0]  %s1469_s0, 128, %s25_s26, [#allocation3]  }
  0x34   :  { %s1284_s27 = smov [#allocation7]   ;;  %s1285_s29 = smov [#allocation10]  }
  0x35   :  { %s47_s28 = sshll.u32 %s1284_s27, 4  ;;  %s75_s30 = sshll.u32 %s1285_s29, 4  ;;  %s48_s28 = int_to_ptr.vmem [resolvable:$true] %s47_s28  ;;  %s76_s30 = int_to_ptr.vmem [resolvable:$true] %s75_s30 }
  0x36   :  { %s1205_s13 = scalar_lea.hbm %s1472_s3, 1024 }
  0x37   :  { %p1206_p10 = scmp.ne.s32.totalorder %s1472_s3, %s1205_s13  ;;  %p1209_p11 = scmp.lt.u32.totalorder %s1205_s13, %s1472_s3 }
  0x39   :  { %p1211_p12 = pnand %p1209_p11, %p1206_p10 }
  0x3b   :  { %1214 = shalt.err (!%p1211_p12)
}
  0x3c   :  { %s1215_s0 = scalar_lea.vmem %s48_s28, 1024  ;;  %p1220_p0 = scmp.lt.s32.totalorder %s48_s28, %s48_s28 }
  0x3d   :  { %p1216_p13 = scmp.ne.s32.totalorder %s48_s28, %s1215_s0  ;;  %p1221_p1 = scmp.lt.s32.totalorder %s1215_s0, %s1215_s0 }
  0x3f   :  { %p1222_p2 = por %p1221_p1, %p1220_p0 }
  0x41   :  { %p1223_p3 = pnand %p1222_p2, %p1216_p13 }
  0x43   :  { %1226 = shalt.err (!%p1223_p3)
}
  0x44   :  { %53 = dma.hbm_to_vmem [thread:$0]  %s1472_s3, 1024, %s48_s28, [#allocation6], %s1280_s19, %s1280_s19, %s1281_s20  }
  0x45   :  { %s1227_s21 = scalar_lea.hbm %s1476_s7, 5120 }
  0x46   :  { %p1228_p4 = scmp.ne.s32.totalorder %s1476_s7, %s1227_s21  ;;  %p1231_p5 = scmp.lt.u32.totalorder %s1227_s21, %s1476_s7 }
  0x48   :  { %p1233_p6 = pnand %p1231_p5, %p1228_p4 }
  0x4a   :  { %1236 = shalt.err (!%p1233_p6)
}
  0x4b   :  { %s1237_s24 = scalar_lea.vmem %s76_s30, 5120  ;;  %p1242_p8 = scmp.lt.s32.totalorder %s76_s30, %s76_s30 }
  0x4c   :  { %p1238_p7 = scmp.ne.s32.totalorder %s76_s30, %s1237_s24  ;;  %p1243_p9 = scmp.lt.s32.totalorder %s1237_s24, %s1237_s24 }
  0x4e   :  { %p1244_p10 = por %p1243_p9, %p1242_p8 }
  0x50   :  { %p1245_p11 = pnand %p1244_p10, %p1238_p7 }
  0x52   :  { %1248 = shalt.err (!%p1245_p11)
}
  0x53   :  { %s1286_s3 = smov 320   ;;  %s1287_s19 = smov 20  }
  0x54   :  { %81 = dma.hbm_to_vmem [thread:$0]  %s1476_s7, 5120, %s76_s30, [#allocation9], %s1286_s3, %s1286_s3, %s1287_s19  }
  0x55   :  { %1271 = dma.done.wait [#allocation3], 128  }
  0x56   :  { %1272 = vsyncadd [#allocation3], 4294967168 }
  0x57   :  { %1273 = dma.done.wait [#allocation6], 1280  }
  0x58   :  { %1274 = vsyncadd [#allocation6], 4294966016 }
  0x59   :  { %1275 = dma.done.wait [#allocation9], 6144  }
  0x5a   :  { %1276 = vsyncadd [#allocation9], 4294961152  ;;  %v1288_v0 = vmov 0.0   ;;  %vm1289_vm0 = vmmov 0   ;;  %v1049_v1 = vld [vmem:[#allocation5] sm:$0xff]   ;;  %v1050_v2 = vld [vmem:[#allocation5 + $0x8] sm:$0xff]  }
  0x5b   :  { %968 = vmatprep.subr.bf16.mxu0 %v1288_v0  ;;  %972 = vmatprep.mubr.msk.bf16.mxu0 %vm1289_vm0, %v1288_v0  ;;  %v100_v3 = vld [vmem:[#allocation2] sm:$0xff]  ;;  %v1051_v4 = vld [vmem:[#allocation7] sm:$0xff]   ;;  %vm125_vm1 = vcmask 261120   ;;  %v1053_v7 = vld [vmem:[#allocation7 + $0x10] sm:$0xff]  }
  0x5c   :  { %976 = vmatprep.subr.bf16.mxu1 %v1288_v0  ;;  %992 = vmatprep.mubr.msk.bf16.mxu1 %vm1289_vm0, %v1288_v0  ;;  %v101_v5 = vpack.c.bf16 %v100_v3, %v100_v3  ;;  %v1052_v6 = vld [vmem:[#allocation7 + $0x8] sm:$0xff]   ;;  %v1054_v8 = vld [vmem:[#allocation7 + $0x18] sm:$0xff]   ;;  %v1055_v9 = vld [vmem:[#allocation7 + $0x20] sm:$0xff]  }
  0x5d   :  { %969 = vmatpush3.bf16.msra.mxu0 %v1049_v1  ;;  %977 = vmatpush3.bf16.msra.mxu1 %v1051_v4  ;;  %v1056_v10 = vld [vmem:[#allocation7 + $0x28] sm:$0xff]   ;;  %v1057_v11 = vld [vmem:[#allocation7 + $0x30] sm:$0xff]   ;;  %v1058_v12 = vld [vmem:[#allocation7 + $0x38] sm:$0xff]  }
  0x5e   :  { %970 = vmatprep.subr.bf16.mxu0 %v1288_v0  ;;  %978 = vmatprep.subr.bf16.mxu1 %v1288_v0  ;;  %v1059_v13 = vld [vmem:[#allocation8] sm:$0xff]   ;;  %v1060_v14 = vld [vmem:[#allocation8 + $0x8] sm:$0xff]   ;;  %v1061_v15 = vld [vmem:[#allocation8 + $0x10] sm:$0xff]  }
  0x5f   :  { %v1062_v16 = vld [vmem:[#allocation8 + $0x18] sm:$0xff]   ;;  %v1063_v17 = vld [vmem:[#allocation8 + $0x20] sm:$0xff]   ;;  %v1064_v18 = vld [vmem:[#allocation8 + $0x28] sm:$0xff]  }
  0x60   :  { %v876_v19 = vld [vmem:[%s1471_s2] ss:$0 sm:$0xff]  ;;  %v1065_v27 = vld [vmem:[#allocation8 + $0x30] sm:$0xff]   ;;  %v1066_v28 = vld [vmem:[#allocation8 + $0x38] sm:$0xff]  }
  0x61   :  { %971 = vmatpush3.bf16.msra.mxu0 %v1050_v2  ;;  %979 = vmatpush3.bf16.msra.mxu1 %v1052_v6  ;;  %v1067_v29 = vld [vmem:[#allocation10] ss:$20 sps:$4 sm:$0xff]   ;;  %v1069_v30 = vld [vmem:[#allocation10 + $0x4] ss:$20 sps:$4 sm:$0xff]   ;;  %v1073_v33 = vld [vmem:[#allocation10 + $0x28] ss:$20 sps:$4 sm:$0xff]  }
  0x62   :  { %996 = vmatprep.subr.bf16.mxu0 %v1288_v0  ;;  %980 = vmatprep.subr.bf16.mxu1 %v1288_v0  ;;  %v1072_v31 = vld [vmem:[#allocation10 + $0xc] ss:$20 sps:$4 sm:$0xff]   ;;  %v1081_v34 = vld [vmem:[#allocation10 + $0x54] ss:$20 sps:$4 sm:$0xff]   ;;  %v1079_v35 = vld [vmem:[#allocation10 + $0x50] ss:$20 sps:$4 sm:$0xff]  }
  0x63   :  { %v1075_v32 = vld [vmem:[#allocation10 + $0x2c] ss:$20 sps:$4 sm:$0xff]   ;;  %v1087_v36 = vld [vmem:[#allocation10 + $0x7c] ss:$20 sps:$4 sm:$0xff]   ;;  %v1093_v38 = vld [vmem:[#allocation10 + $0xa4] ss:$20 sps:$4 sm:$0xff]  }
  0x64   :  { %973 = vmatmul.mubr.msk.bf16.vlgmr.msra.gmra.mrb[0].mxu0 %vm125_vm1, %v101_v5  ;;  %v1085_v37 = vld [vmem:[#allocation10 + $0x78] ss:$20 sps:$4 sm:$0xff]   ;;  %v1091_v39 = vld [vmem:[#allocation10 + $0xa0] ss:$20 sps:$4 sm:$0xff]   ;;  %v1097_v41 = vld [vmem:[#allocation10 + $0xc8] ss:$20 sps:$4 sm:$0xff]  }
  0x65   :  { %1012 = vmatprep.mubr.msk.bf16.mxu0 %vm1289_vm0, %v1288_v0  ;;  %981 = vmatpush3.bf16.msra.mxu1 %v1053_v7  ;;  %v1099_v40 = vld [vmem:[#allocation10 + $0xcc] ss:$20 sps:$4 sm:$0xff]   ;;  %v1105_v42 = vld [vmem:[#allocation10 + $0xf4] ss:$20 sps:$4 sm:$0xff]   ;;  %v1103_v43 = vld [vmem:[#allocation10 + $0xf0] ss:$20 sps:$4 sm:$0xff]  }
  0x66   :  { %982 = vmatprep.subr.bf16.mxu1 %v1288_v0  ;;  %997 = vmatpush3.bf16.msra.mxu0 %v1059_v13  ;;  %v880_v44 = vld [vmem:[%s1473_s4] ss:$0 sm:$0xff]  ;;  %v1076_v54 = vld [vmem:[#allocation10 + $0x30] ss:$20 sps:$4 sm:$0xff]   ;;  %v1082_v56 = vld [vmem:[#allocation10 + $0x58] ss:$20 sps:$4 sm:$0xff]  }
  0x67   :  { %998 = vmatprep.subr.bf16.mxu0 %v1288_v0  ;;  %v1070_v51 = vld [vmem:[#allocation10 + $0x8] ss:$20 sps:$4 sm:$0xff]   ;;  %v1090_v57 = vld [vmem:[#allocation10 + $0x84] ss:$20 sps:$4 sm:$0xff]   ;;  %v1088_v58 = vld [vmem:[#allocation10 + $0x80] ss:$20 sps:$4 sm:$0xff]  }
  0x68   :  { %v1078_v53 = vld [vmem:[#allocation10 + $0x34] ss:$20 sps:$4 sm:$0xff]   ;;  %v1084_v55 = vld [vmem:[#allocation10 + $0x5c] ss:$20 sps:$4 sm:$0xff]   ;;  %v1096_v59 = vld [vmem:[#allocation10 + $0xac] ss:$20 sps:$4 sm:$0xff]  }
  0x69   :  { %983 = vmatpush3.bf16.msra.mxu1 %v1054_v8  ;;  %v1094_v60 = vld [vmem:[#allocation10 + $0xa8] ss:$20 sps:$4 sm:$0xff]   ;;  %v1100_v62 = vld [vmem:[#allocation10 + $0xd0] ss:$20 sps:$4 sm:$0xff]   ;;  %v1106_v1 = vld [vmem:[#allocation10 + $0xf8] ss:$20 sps:$4 sm:$0xff]  }
  0x6a   :  { %984 = vmatprep.subr.bf16.mxu1 %v1288_v0  ;;  %999 = vmatpush3.bf16.msra.mxu0 %v1060_v14  ;;  %v1102_v61 = vld [vmem:[#allocation10 + $0xd4] ss:$20 sps:$4 sm:$0xff]   ;;  %v1108_v63 = vld [vmem:[#allocation10 + $0xfc] ss:$20 sps:$4 sm:$0xff]   ;;  %v1109_v3 = vld [vmem:[#allocation10 + $0x118] ss:$20 sps:$4 sm:$0xff]  }
  0x6b   :  { %1000 = vmatprep.subr.bf16.mxu0 %v1288_v0  ;;  %v1111_v2 = vld [vmem:[#allocation10 + $0x11c] ss:$20 sps:$4 sm:$0xff]   ;;  %v1114_v4 = vld [vmem:[#allocation10 + $0x124] ss:$20 sps:$4 sm:$0xff]   ;;  %v1112_v5 = vld [vmem:[#allocation10 + $0x120] ss:$20 sps:$4 sm:$0xff]  }
  0x6c   :  { %v1290_v6 = vmov 0   ;;  %v889_v7 = vld [vmem:[%s1475_s6] ss:$0 sm:$0xff]  ;;  %v1115_v14 = vld [vmem:[#allocation10 + $0x10] ss:$20 sps:$4 sm:$0xff]  }
  0x6d   :  { %985 = vmatpush3.bf16.msra.mxu1 %v1055_v9 }
  0x6e   :  { %986 = vmatprep.subr.bf16.mxu1 %v1288_v0  ;;  %1001 = vmatpush3.bf16.msra.mxu0 %v1061_v15 }
  0x6f   :  { %1002 = vmatprep.subr.bf16.mxu0 %v1288_v0 }
  0x71   :  { %987 = vmatpush3.bf16.msra.mxu1 %v1056_v10 }
  0x72   :  { %988 = vmatprep.subr.bf16.mxu1 %v1288_v0  ;;  %1003 = vmatpush3.bf16.msra.mxu0 %v1062_v16  ;;  %v1116_v16 = vld [vmem:[#allocation10 + $0x38] ss:$20 sps:$4 sm:$0xff]  }
  0x73   :  { %1004 = vmatprep.subr.bf16.mxu0 %v1288_v0 }
  0x75   :  { %989 = vmatpush3.bf16.msra.mxu1 %v1057_v11 }
  0x76   :  { %990 = vmatprep.subr.bf16.mxu1 %v1288_v0  ;;  %1005 = vmatpush3.bf16.msra.mxu0 %v1063_v17  ;;  %v1117_v17 = vld [vmem:[#allocation10 + $0x60] ss:$20 sps:$4 sm:$0xff]  }
  0x77   :  { %1006 = vmatprep.subr.bf16.mxu0 %v1288_v0 }
  0x79   :  { %991 = vmatpush3.bf16.msra.mxu1 %v1058_v12 }
  0x7a   :  { %1007 = vmatpush3.bf16.msra.mxu0 %v1064_v18  ;;  %680 = vmatprep.subr.bf16.mxu1 %v1069_v30  ;;  %v1118_v18 = vld [vmem:[#allocation10 + $0x88] ss:$20 sps:$4 sm:$0xff]  }
  0x7b   :  { %1008 = vmatprep.subr.bf16.mxu0 %v1288_v0 }
  0x7e   :  { %1009 = vmatpush3.bf16.msra.mxu0 %v1065_v27 }
  0x7f   :  { %1010 = vmatprep.subr.bf16.mxu0 %v1288_v0 }
  0x82   :  { %1011 = vmatpush3.bf16.msra.mxu0 %v1066_v28 }
  0x83   :  { %721 = vmatprep.subr.bf16.mxu0 %v1072_v31 }
 0x137   :  { %v163_v20 = vpop.f32.mrb[0].mxu0 }
 0x138   :  { %v164_v21 = vadd.f32 %v876_v19, %v163_v20  ;;  %v974_v22 = vpop.f32.mrb[1].mxu0  ;;  %v1119_v19 = vld [vmem:[#allocation10 + $0xb0] ss:$20 sps:$4 sm:$0xff]   ;;  %v1120_v20 = vld [vmem:[#allocation10 + $0xd8] ss:$20 sps:$4 sm:$0xff]  }
 0x139   :  { %v166_v23 = vpop.f32.mrb[2].mxu0  ;;  %v1122_v22 = vld [vmem:[#allocation10 + $0x128] ss:$20 sps:$4 sm:$0xff]  }
 0x13a   :  { %v169_v24 = vmax.f32 %v164_v21, 0.0  ;;  %v975_v25 = vpop.f32.mrb[3].mxu0  ;;  %v1121_v21 = vld [vmem:[#allocation10 + $0x100] ss:$20 sps:$4 sm:$0xff]   ;;  %v447_v23 = vlaneseq }
 0x13c   :  { %v170_v26 = vpack.c.bf16 %v169_v24, %v169_v24  ;;  %v448_v24 = vshrl.u32 %v447_v23, 7 }
 0x13e   :  { %993 = vmatmul.mubr.bf16.vlgmr.msra.gmra.mrb[0].mxu1 %v170_v26  ;;  %v457_v25 = vsub.s32 2, %v448_v24  ;;  %v445_v26 = vld [vmem:[%s1477_s8] sm:$0x1f]  ;;  %v453_v27 = vsub.s32 1, %v448_v24  ;;  %v461_v28 = vsub.s32 3, %v448_v24  ;;  %s1291_s8 = smov [#allocation11]  }
 0x13f   :  { %681 = vmatpush1.bf16.msra.mxu1 %v1067_v29  ;;  %712 = vmatprep.mubr.bf16.mxu1 %v1290_v6  ;;  %s865_s12 = sshll.u32 %s1291_s8, 4  ;;  %s866_s12 = int_to_ptr.vmem [resolvable:$true] %s865_s12 }
 0x140   :  { %682 = vmatprep.subr.bf16.mxu1 %v1075_v32  ;;  %v458_v29 = vrot.slane %v445_v26, %v457_v25  ;;  %v454_v30 = vrot.slane %v445_v26, %v453_v27  ;;  %s1249_s13 = scalar_lea.vmem %s866_s12, 256  ;;  %p1254_p13 = scmp.lt.s32.totalorder %s866_s12, %s866_s12 }
 0x141   :  { %p1250_p12 = scmp.ne.s32.totalorder %s866_s12, %s1249_s13  ;;  %p1255_p0 = scmp.lt.s32.totalorder %s1249_s13, %s1249_s13 }
 0x143   :  { %683 = vmatpush1.bf16.msra.mxu1 %v1073_v33  ;;  %v462_v33 = vrot.slane %v445_v26, %v461_v28  ;;  %p1256_p1 = por %p1255_p0, %p1254_p13 }
 0x144   :  { %684 = vmatprep.subr.bf16.mxu1 %v1081_v34 }
 0x145   :  { %p1257_p2 = pnand %p1256_p1, %p1250_p12 }
 0x147   :  { %685 = vmatpush1.bf16.msra.mxu1 %v1079_v35 }
 0x148   :  { %686 = vmatprep.subr.bf16.mxu1 %v1087_v36 }
 0x14b   :  { %687 = vmatpush1.bf16.msra.mxu1 %v1085_v37 }
 0x14c   :  { %688 = vmatprep.subr.bf16.mxu1 %v1093_v38 }
 0x14f   :  { %689 = vmatpush1.bf16.msra.mxu1 %v1091_v39 }
 0x150   :  { %690 = vmatprep.subr.bf16.mxu1 %v1099_v40 }
 0x153   :  { %691 = vmatpush1.bf16.msra.mxu1 %v1097_v41 }
 0x154   :  { %692 = vmatprep.subr.bf16.mxu1 %v1105_v42 }
 0x157   :  { %693 = vmatpush1.bf16.msra.mxu1 %v1103_v43 }
 0x158   :  { %694 = vmatprep.subr.bf16.mxu1 %v1111_v2 }
 0x15b   :  { %695 = vmatpush1.bf16.msra.mxu1 %v1109_v3 }
 0x15c   :  { %1016 = vmatprep.subr.bf16.mxu1 %v1288_v0 }
 0x211   :  { %v276_v45 = vpop.f32.mrb[0].mxu1 }
 0x212   :  { %v277_v46 = vadd.f32 %v880_v44, %v276_v45  ;;  %v994_v47 = vpop.f32.mrb[1].mxu1  ;;  %v465_v44 = vsub.s32 4, %v448_v24 }
 0x213   :  { %v279_v48 = vpop.f32.mrb[2].mxu1 }
 0x214   :  { %v282_v49 = vmax.f32 %v277_v46, 0.0  ;;  %v995_v50 = vpop.f32.mrb[3].mxu1  ;;  %v466_v45 = vrot.slane %v445_v26, %v465_v44  ;;  %v449_v46 = vsub.s32 0, %v448_v24 }
 0x216   :  { %v283_v52 = vpack.c.bf16 %v282_v49, %v282_v49  ;;  %v450_v50 = vrot.slane %v445_v26, %v449_v46 }
 0x218   :  { %1013 = vmatmul.mubr.bf16.vlgmr.msra.gmra.mrb[4].mxu0 %v283_v52 }
 0x219   :  { %722 = vmatpush1.bf16.msra.mxu0 %v1070_v51  ;;  %753 = vmatprep.mubr.bf16.mxu0 %v1290_v6 }
 0x21a   :  { %723 = vmatprep.subr.bf16.mxu0 %v1078_v53 }
 0x21d   :  { %724 = vmatpush1.bf16.msra.mxu0 %v1076_v54 }
 0x21e   :  { %725 = vmatprep.subr.bf16.mxu0 %v1084_v55 }
 0x221   :  { %726 = vmatpush1.bf16.msra.mxu0 %v1082_v56 }
 0x222   :  { %727 = vmatprep.subr.bf16.mxu0 %v1090_v57 }
 0x225   :  { %728 = vmatpush1.bf16.msra.mxu0 %v1088_v58 }
 0x226   :  { %729 = vmatprep.subr.bf16.mxu0 %v1096_v59 }
 0x229   :  { %730 = vmatpush1.bf16.msra.mxu0 %v1094_v60 }
 0x22a   :  { %731 = vmatprep.subr.bf16.mxu0 %v1102_v61 }
 0x22d   :  { %732 = vmatpush1.bf16.msra.mxu0 %v1100_v62 }
 0x22e   :  { %733 = vmatprep.subr.bf16.mxu0 %v1108_v63 }
 0x231   :  { %734 = vmatpush1.bf16.msra.mxu0 %v1106_v1 }
 0x232   :  { %735 = vmatprep.subr.bf16.mxu0 %v1114_v4 }
 0x235   :  { %736 = vmatpush1.bf16.msra.mxu0 %v1112_v5 }
 0x2eb   :  { %v389_v8 = vpop.f32.mrb[4].mxu0 }
 0x2ec   :  { %v390_v9 = vadd.f32 %v889_v7, %v389_v8  ;;  %v1014_v10 = vpop.f32.mrb[5].mxu0 }
 0x2ed   :  { %v392_v11 = vpop.f32.mrb[6].mxu0 }
 0x2ee   :  { %v395_v12 = vmax.f32 %v390_v9, 0.0  ;;  %v1015_v13 = vpop.f32.mrb[7].mxu0 }
 0x2f0   :  { %v396_v15 = vpack.c.bf16 %v395_v12, %v395_v12 }
 0x2f2   :  { %713 = vmatmul.mubr.bf16.vlgmr.msra.gmra.mrb[4].mxu1 %v396_v15  ;;  %754 = vmatmul.mubr.bf16.vlgmr.msra.gmra.mrb[8].mxu0 %v396_v15 }
 0x2f3   :  { %1017 = vmatpush3.bf16.msra.mxu1 %v1115_v14  ;;  %1032 = vmatprep.mubr.msk.bf16.mxu1 %vm1289_vm0, %v1288_v0 }
 0x2f4   :  { %1018 = vmatprep.subr.bf16.mxu1 %v1288_v0 }
 0x2f7   :  { %1019 = vmatpush3.bf16.msra.mxu1 %v1116_v16 }
 0x2f8   :  { %1020 = vmatprep.subr.bf16.mxu1 %v1288_v0 }
 0x2fb   :  { %1021 = vmatpush3.bf16.msra.mxu1 %v1117_v17 }
 0x2fc   :  { %1022 = vmatprep.subr.bf16.mxu1 %v1288_v0 }
 0x2ff   :  { %1023 = vmatpush3.bf16.msra.mxu1 %v1118_v18 }
 0x300   :  { %1024 = vmatprep.subr.bf16.mxu1 %v1288_v0 }
 0x303   :  { %1025 = vmatpush3.bf16.msra.mxu1 %v1119_v19 }
 0x304   :  { %1026 = vmatprep.subr.bf16.mxu1 %v1288_v0 }
 0x307   :  { %1027 = vmatpush3.bf16.msra.mxu1 %v1120_v20 }
 0x308   :  { %1028 = vmatprep.subr.bf16.mxu1 %v1288_v0 }
 0x30b   :  { %1029 = vmatpush3.bf16.msra.mxu1 %v1121_v21 }
 0x30c   :  { %1030 = vmatprep.subr.bf16.mxu1 %v1288_v0 }
 0x30f   :  { %1031 = vmatpush3.bf16.msra.mxu1 %v1122_v22 }
 0x312   :  { %1033 = vmatmul.mubr.bf16.vlgmr.msra.gmra.mrb[8].mxu1 %v396_v15 }
 0x3c5   :  { %v714_v31 = vpop.f32.mrb[4].mxu1  ;;  %v755_v32 = vpop.f32.mrb[8].mxu0 }
 0x3c6   :  { %v756_v34 = vadd.f32 %v755_v32, %v458_v29  ;;  %v716_v35 = vpop.f32.mrb[5].mxu1  ;;  %v757_v36 = vpop.f32.mrb[9].mxu0  ;;  %v715_v55 = vadd.f32 %v714_v31, %v450_v50 }
 0x3c7   :  { %v717_v0 = vadd.f32 %v716_v35, %v454_v30  ;;  %v718_v37 = vpop.f32.mrb[6].mxu1  ;;  %v759_v38 = vpop.f32.mrb[10].mxu0  ;;  %v758_v42 = vadd.f32 %v757_v36, %v462_v33 }
 0x3c8   :  { %v719_v39 = vpop.f32.mrb[7].mxu1  ;;  %v760_v40 = vpop.f32.mrb[11].mxu0 }
 0x3c9   :  { %v803_v41 = vadd.f32 %v756_v34, %v717_v0 }
 0x3cb   :  { %v804_v43 = vadd.f32 %v803_v41, %v758_v42 }
 0x3e5   :  { %v796_v47 = vpop.f32.mrb[8].mxu1 }
 0x3e6   :  { %v797_v48 = vadd.f32 %v796_v47, %v466_v45  ;;  %v1034_v49 = vpop.f32.mrb[9].mxu1 }
 0x3e7   :  { %v799_v51 = vpop.f32.mrb[10].mxu1 }
 0x3e8   :  { %v805_v52 = vadd.f32 %v804_v43, %v797_v48  ;;  %v1035_v53 = vpop.f32.mrb[11].mxu1 }
 0x3ea   :  { %v806_v54 = vmul.f32 0.25, %v805_v52 }
 0x3ec   :  { %v846_v56 = vsub.f32 %v797_v48, %v806_v54  ;;  %v833_v57 = vsub.f32 %v758_v42, %v806_v54  ;;  %v807_v58 = vsub.f32 %v717_v0, %v806_v54  ;;  %v820_v59 = vsub.f32 %v756_v34, %v806_v54 }
 0x3ee   :  { %v834_v60 = vadd.f32 %v833_v57, %v715_v55  ;;  %v808_v61 = vadd.f32 %v807_v58, %v715_v55  ;;  %v847_v62 = vadd.f32 %v846_v56, %v715_v55  ;;  %v821_v63 = vadd.f32 %v820_v59, %v715_v55 }
 0x3f0   :  { %835 = vmax.xlane.f32.xlu1 %v834_v60  ;;  %809 = vmax.xlane.f32.xlu0 %v808_v61 }
 0x3f4   :  { %848 = vmax.xlane.f32.xlu1 %v847_v62  ;;  %822 = vmax.xlane.f32.xlu0 %v821_v63 }
 0x47d   :  { %v836_v1 = vpop.xlane.xlu1 %835  ;;  %v810_v2 = vpop.xlane.xlu0 %809 }
 0x47e   :  { %v837_v3 = vsub.f32 %v834_v60, %v836_v1  ;;  %v811_v4 = vsub.f32 %v808_v61, %v810_v2 }
 0x480   :  { %v812_v5 = vmul.f32 1.442695, %v811_v4  ;;  %v838_v8 = vmul.f32 1.442695, %v837_v3 }
 0x481   :  { %v849_v6 = vpop.xlane.xlu1 %848  ;;  %v823_v7 = vpop.xlane.xlu0 %822 }
 0x482   :  { %v824_v9 = vsub.f32 %v821_v63, %v823_v7  ;;  %1123 = vpow2.f32 %v812_v5  ;;  %v850_v10 = vsub.f32 %v847_v62, %v849_v6 }
 0x483   :  { %1125 = vpow2.f32 %v838_v8 }
 0x484   :  { %v825_v11 = vmul.f32 1.442695, %v824_v9  ;;  %v851_v12 = vmul.f32 1.442695, %v850_v10 }
 0x486   :  { %1127 = vpow2.f32 %v825_v11 }
 0x487   :  { %1129 = vpow2.f32 %v851_v12 }
 0x48c   :  { %v1124_v13 = vpop.eup %1123 }
 0x48d   :  { %814 = vadd.xlane.f32.xlu0 %v1124_v13  ;;  %v1126_v14 = vpop.eup %1125 }
 0x490   :  { %v1128_v15 = vpop.eup %1127 }
 0x491   :  { %840 = vadd.xlane.f32.xlu0 %v1126_v14  ;;  %827 = vadd.xlane.f32.xlu1 %v1128_v15  ;;  %v1130_v16 = vpop.eup %1129 }
 0x495   :  { %853 = vadd.xlane.f32.xlu1 %v1130_v16 }
 0x51a   :  { %v815_v17 = vpop.xlane.xlu0 %814 }
 0x51b   :  { %1131 = vrcp.f32 %v815_v17 }
 0x51e   :  { %v828_v18 = vpop.xlane.xlu1 %827  ;;  %v841_v19 = vpop.xlane.xlu0 %840 }
 0x51f   :  { %1133 = vrcp.f32 %v828_v18 }
 0x520   :  { %1135 = vrcp.f32 %v841_v19 }
 0x522   :  { %v854_v20 = vpop.xlane.xlu1 %853 }
 0x523   :  { %1137 = vrcp.f32 %v854_v20 }
 0x525   :  { %v1132_v21 = vpop.eup %1131 }
 0x526   :  { %v817_v22 = vmul.f32 %v1132_v21, %v1124_v13 }
 0x528   :  { %v818_v23 = vpack.c.bf16 %v817_v22, %v817_v22 }
 0x529   :  { %v1134_v24 = vpop.eup %1133 }
 0x52a   :  { %v1136_v25 = vpop.eup %1135  ;;  %819 = vst [vmem:[#allocation11] sm:$0xf] %v818_v23  ;;  %v830_v26 = vmul.f32 %v1134_v24, %v1128_v15 }
 0x52b   :  { %v843_v27 = vmul.f32 %v1136_v25, %v1126_v14 }
 0x52c   :  { %v831_v28 = vpack.c.bf16 %v830_v26, %v830_v26 }
 0x52d   :  { %v1138_v29 = vpop.eup %1137  ;;  %v844_v30 = vpack.c.bf16 %v843_v27, %v843_v27 }
 0x52e   :  { %v856_v31 = vmul.f32 %v1138_v29, %v1130_v16  ;;  %832 = vst [vmem:[#allocation11 + $0x4] sm:$0xf] %v831_v28 }
 0x52f   :  { %845 = vst [vmem:[#allocation11 + $0x8] sm:$0xf] %v844_v30 }
 0x530   :  { %v857_v32 = vpack.c.bf16 %v856_v31, %v856_v31 }
 0x532   :  { %858 = vst [vmem:[#allocation11 + $0xc] sm:$0xf] %v857_v32 }
 0x533   :  { %1260 = shalt.err (!%p1257_p2)
}
 0x534   :  { %s1261_s14 = scalar_lea.hbm %s1478_s9, 256 }
 0x535   :  { %p1262_p3 = scmp.ne.s32.totalorder %s1478_s9, %s1261_s14  ;;  %p1265_p4 = scmp.lt.u32.totalorder %s1261_s14, %s1478_s9 }
 0x537   :  { %p1267_p5 = pnand %p1265_p4, %p1262_p3 }
 0x539   :  { %1270 = shalt.err (!%p1267_p5)
}
 0x53a   :  { %868 = dma.vmem_to_hbm [thread:$0]  %s866_s12, 256, %s1478_s9, [#allocation4]  }
 0x53b   :  { %1277 = dma.done.wait [#allocation4], 256  }
 0x53c   :  { %1278 = vsyncadd [#allocation4], 4294967040 }
 0x53d   :  { %872 = vsyncpa [#allocation3], 1 }
 0x53e   :  { %873 = vsyncpa [#allocation6], 1 }
 0x53f   :  { %874 = vsyncpa [#allocation9], 1 }
 0x540   :  { %875 = vsyncpa [#allocation4], 1 }

</bundles_post_ra>
